<compile_context>
chip_gen: v5e
topology: v5e:2x2
jax: 0.10.0
libtpu: 0.0.40
codegen_flags: <defaults>
</compile_context>

<pallas_src>
import math

import jax
import jax.numpy as jnp
from jax.experimental import pallas as pl
from jax.experimental.pallas import tpu as pltpu

B, STYLE_DIM, C, H, W = 2, 32, 32, 16, 16
RGB = 3
KH = KW = 3
LRELU_SLOPE = 0.2
LRELU_GAIN = math.sqrt(2.0)


# ----------------------------------------------------------------------------
# Pallas kernel: fused (im2col conv1 + noise + bias + leaky-ReLU + toRGB)
# ----------------------------------------------------------------------------
def _synthesis_kernel(p_ref, w1_ref, nz_ref, b1_ref, w2_ref, b2_ref, img_ref):
    # p_ref  : (B, 9*C, H*W)  channel-major im2col patches
    # w1_ref : (B, C, 9*C)    per-sample modulated+demodulated conv1 weight (pre-transposed)
    # nz_ref : (1, H*W)       noise * noise_strength (shared across batch & channels)
    # b1_ref : (C, 1)         conv1 bias (channel-major column)
    # w2_ref : (B, RGB, C)    per-sample modulated toRGB weight (pre-transposed)
    # b2_ref : (RGB, 1)       toRGB bias
    # img_ref: (B, RGB, H*W)  lane-dense NCHW-flattened output
    nz = nz_ref[...]
    b1 = b1_ref[...]
    b2 = b2_ref[...]
    for b in range(p_ref.shape[0]):                      # static unroll over small batch
        # Modulated+demodulated 3x3 conv as one im2col matmul: (C, 9C) @ (9C, HW).
        y = jnp.dot(w1_ref[b], p_ref[b], preferred_element_type=jnp.float32)
        y = y + nz + b1                                   # noise injection + bias
        y = jnp.where(y >= 0.0, y, LRELU_SLOPE * y) * LRELU_GAIN   # fused leaky-ReLU
        # Modulated 1x1 toRGB: (RGB, C) @ (C, HW) -> lane-dense (RGB, HW).
        img_ref[b] = jnp.dot(w2_ref[b], y, preferred_element_type=jnp.float32) + b2


def _run_synthesis_kernel(patches, w1t, nz_row, b1_col, w2t, b2_col):
    bn, kc, hw = patches.shape
    return pl.pallas_call(
        _synthesis_kernel,
        out_shape=jax.ShapeDtypeStruct((bn, RGB, hw), jnp.float32),
        grid=(1,),                                        # single step: no per-sample grid overhead
        in_specs=[
            pl.BlockSpec((bn, kc, hw), lambda i: (0, 0, 0)),
            pl.BlockSpec((bn, C, kc), lambda i: (0, 0, 0)),
            pl.BlockSpec((1, hw), lambda i: (0, 0)),
            pl.BlockSpec((C, 1), lambda i: (0, 0)),
            pl.BlockSpec((bn, RGB, C), lambda i: (0, 0, 0)),
            pl.BlockSpec((RGB, 1), lambda i: (0, 0)),
        ],
        out_specs=pl.BlockSpec((bn, RGB, hw), lambda i: (0, 0, 0)),
        compiler_params=pltpu.CompilerParams(dimension_semantics=("arbitrary",)),
    )(patches, w1t, nz_row, b1_col, w2t, b2_col)


# ----------------------------------------------------------------------------
# Synthesis network (glue in plain JAX: style affines, weight fold, im2col)
# ----------------------------------------------------------------------------
def init_params(key):
    ks = jax.random.split(key, 5)
    p = {}
    p["A1_w"] = jax.random.normal(ks[0], (STYLE_DIM, C), jnp.float32) / math.sqrt(STYLE_DIM)
    p["A1_b"] = jnp.ones((C,), jnp.float32)               # EqualLinear bias init = 1
    p["conv1_w"] = jax.random.normal(ks[1], (KH, KW, C, C), jnp.float32) / math.sqrt(KH * KW * C)
    p["conv1_b"] = jnp.zeros((C,), jnp.float32)
    p["noise_strength1"] = jnp.float32(0.1)
    p["noise1"] = jax.random.normal(ks[2], (1, H, W, 1), jnp.float32)
    p["A2_w"] = jax.random.normal(ks[3], (STYLE_DIM, C), jnp.float32) / math.sqrt(STYLE_DIM)
    p["A2_b"] = jnp.ones((C,), jnp.float32)
    p["rgb_w"] = jax.random.normal(ks[4], (C, RGB), jnp.float32) / math.sqrt(C)
    p["rgb_b"] = jnp.zeros((RGB,), jnp.float32)
    return p


def synthesis_forward(params, style, en_feats_nchw, noise=None):
    # style: (B, STYLE_DIM); en_feats: (B, C, H, W) NCHW like PyTorch.
    x = en_feats_nchw.astype(jnp.float32)                 # stay channel-major (no transpose)
    bn = x.shape[0]

    # Style affines.
    s1 = style @ params["A1_w"] + params["A1_b"]          # (B, C)
    s2 = style @ params["A2_w"] + params["A2_b"]          # (B, C)

    # StyleGAN2 modulation + demodulation folded into tiny per-sample weights.
    w1 = params["conv1_w"]                                 # (KH, KW, Cin, Cout)
    wmod = w1[None] * s1[:, None, None, :, None]           # (B, KH, KW, Cin, Cout)
    d1 = 1.0 / jnp.sqrt(jnp.sum(wmod * wmod, axis=(1, 2, 3)) + 1e-8)   # (B, Cout)
    wdem = wmod * d1[:, None, None, None, :]
    w1t = jnp.transpose(wdem.reshape(bn, KH * KW * C, C), (0, 2, 1))   # (B, Cout, 9*Cin)

    # toRGB modulation (no demod), folded into the 1x1 weight.
    w2t = jnp.transpose(params["rgb_w"][None] * s2[:, :, None], (0, 2, 1))  # (B, RGB, Cin)

    nz_buf = params["noise1"] if noise is None else noise
    nz_row = (nz_buf * params["noise_strength1"]).reshape(1, H * W)

    # Channel-major im2col: (B, 9*Cin, H*W). Pad + 9 slices fuse under jit.
    x_pad = jnp.pad(x, ((0, 0), (0, 0), (1, 1), (1, 1)))
    taps = [x_pad[:, :, dh:dh + H, dw:dw + W].reshape(bn, C, H * W)
            for dh in range(KH) for dw in range(KW)]
    patches = jnp.stack(taps, axis=1).reshape(bn, KH * KW * C, H * W)

    img_flat = _run_synthesis_kernel(
        patches, w1t, nz_row,
        params["conv1_b"].reshape(C, 1), w2t, params["rgb_b"].reshape(RGB, 1))

    return {"img": img_flat.reshape(bn, RGB, H, W),        # free reshape to NCHW (no transpose)
            "noise": nz_buf}


# ----------------------------------------------------------------------------
# Wrapper (mirrors the PyTorch module)
# ----------------------------------------------------------------------------
class Wrapper:
    def __init__(self, params, style_tmp, en_feats_tmp):
        self.params = params
        self.noise = synthesis_forward(params, style_tmp, en_feats_tmp)["noise"]
        self._fwd = jax.jit(
            lambda style, en_feats:
            synthesis_forward(self.params, style, en_feats, noise=None)["img"])

    def __call__(self, style, en_feats):
        return self._fwd(style, en_feats)


# ----------------------------------------------------------------------------
# Pure-JAX reference (for validation only)
# ----------------------------------------------------------------------------
def _reference_img(params, style, en_feats_nchw):
    x = jnp.transpose(en_feats_nchw, (0, 2, 3, 1)).astype(jnp.float32)
    s1 = style @ params["A1_w"] + params["A1_b"]
    w1 = params["conv1_w"]
    d1 = 1.0 / jnp.sqrt(jnp.einsum("xyic,bi->bc", w1 ** 2, s1 ** 2) + 1e-8)
    xm = x * s1[:, None, None, :]
    y = jax.lax.conv_general_dilated(
        xm, w1, (1, 1), "SAME", dimension_numbers=("NHWC", "HWIO", "NHWC"))
    y = y * d1[:, None, None, :]
    y = y + params["noise1"] * params["noise_strength1"]
    y = y + params["conv1_b"]
    y = jnp.where(y >= 0, y, LRELU_SLOPE * y) * LRELU_GAIN
    s2 = style @ params["A2_w"] + params["A2_b"]
    ym = y * s2[:, None, None, :]
    img = jnp.einsum("bhwc,cr->bhwr", ym, params["rgb_w"]) + params["rgb_b"]
    return jnp.transpose(img, (0, 3, 1, 2))


if __name__ == "__main__":
    key = jax.random.PRNGKey(0)
    kp, k1, k2, k3, k4 = jax.random.split(key, 5)
    params = init_params(kp)

    style_tmp = jax.random.normal(k1, (B, STYLE_DIM), jnp.float32)
    en_feats_tmp = jax.random.normal(k2, (B, C, H, W), jnp.float32)
    wrapper = Wrapper(params, style_tmp, en_feats_tmp)

    style = jax.random.normal(k3, (B, STYLE_DIM), jnp.float32)
    en_feats = jax.random.normal(k4, (B, C, H, W), jnp.float32)

    img = wrapper(style, en_feats)
    jax.block_until_ready(img)

    ref = _reference_img(params, style, en_feats)
    assert img.shape == (B, RGB, H, W), img.shape
    err = float(jnp.max(jnp.abs(img - ref)))
    assert jnp.allclose(img, ref, atol=2e-4, rtol=2e-4), err
    print("KERNEL_OK")
</pallas_src>

<mosaic_0001>
module attributes {stable_mosaic.version = 11 : i64} {
  func.func @_synthesis_kernel(%arg0: i32, %arg1: memref<2x288x256xf32, #tpu.memory_space<vmem>>, %arg2: memref<2x32x288xf32, #tpu.memory_space<vmem>>, %arg3: memref<1x256xf32, #tpu.memory_space<vmem>>, %arg4: memref<32x1xf32, #tpu.memory_space<vmem>>, %arg5: memref<2x3x32xf32, #tpu.memory_space<vmem>>, %arg6: memref<3x1xf32, #tpu.memory_space<vmem>>, %arg7: memref<2x3x256xf32, #tpu.memory_space<vmem>>) attributes {dimension_semantics = [#tpu.dimension_semantics<arbitrary>], iteration_bounds = array<i64: 1>, scalar_prefetch = 0 : i64, scratch_operands = 0 : i64, tpu.core_type = #tpu.core_type<tc>, window_params = [{pipeline_mode = #tpu.pipeline_mode<synchronous>, transform_indices = @transform_0, window_bounds = array<i64: 2, 288, 256>}, {pipeline_mode = #tpu.pipeline_mode<synchronous>, transform_indices = @transform_1, window_bounds = array<i64: 2, 32, 288>}, {pipeline_mode = #tpu.pipeline_mode<synchronous>, transform_indices = @transform_2, window_bounds = array<i64: 1, 256>}, {pipeline_mode = #tpu.pipeline_mode<synchronous>, transform_indices = @transform_3, window_bounds = array<i64: 32, 1>}, {pipeline_mode = #tpu.pipeline_mode<synchronous>, transform_indices = @transform_4, window_bounds = array<i64: 2, 3, 32>}, {pipeline_mode = #tpu.pipeline_mode<synchronous>, transform_indices = @transform_5, window_bounds = array<i64: 3, 1>}, {pipeline_mode = #tpu.pipeline_mode<synchronous>, transform_indices = @transform_6, window_bounds = array<i64: 2, 3, 256>}]} {
    %c0 = arith.constant 0 : index
    %c0_0 = arith.constant 0 : index
    %0 = vector.load %arg3[%c0, %c0_0] : memref<1x256xf32, #tpu.memory_space<vmem>>, vector<1x256xf32>
    %c0_1 = arith.constant 0 : index
    %c0_2 = arith.constant 0 : index
    %1 = vector.load %arg4[%c0_1, %c0_2] : memref<32x1xf32, #tpu.memory_space<vmem>>, vector<32x1xf32>
    %c0_3 = arith.constant 0 : index
    %c0_4 = arith.constant 0 : index
    %2 = vector.load %arg6[%c0_3, %c0_4] : memref<3x1xf32, #tpu.memory_space<vmem>>, vector<3x1xf32>
    %c0_5 = arith.constant 0 : index
    %c0_6 = arith.constant 0 : index
    %c0_7 = arith.constant 0 : index
    %3 = vector.load %arg2[%c0_5, %c0_6, %c0_7] : memref<2x32x288xf32, #tpu.memory_space<vmem>>, vector<1x32x288xf32>
    %4 = vector.shape_cast %3 : vector<1x32x288xf32> to vector<32x288xf32>
    %c0_8 = arith.constant 0 : index
    %c0_9 = arith.constant 0 : index
    %c0_10 = arith.constant 0 : index
    %5 = vector.load %arg1[%c0_8, %c0_9, %c0_10] : memref<2x288x256xf32, #tpu.memory_space<vmem>>, vector<1x288x256xf32>
    %6 = vector.shape_cast %5 : vector<1x288x256xf32> to vector<288x256xf32>
    %cst = arith.constant dense<0.000000e+00> : vector<32x256xf32>
    %7 = tpu.matmul %4, %6, %cst {dimension_numbers = #tpu.dot_dimension_numbers<[1], [0], [0], [1], [0, 0, 1, 1], [], []>} : vector<32x288xf32>, vector<288x256xf32>, vector<32x256xf32> -> vector<32x256xf32>
    %8 = vector.broadcast %0 : vector<1x256xf32> to vector<32x256xf32>
    %9 = arith.addf %7, %8 : vector<32x256xf32>
    %10 = vector.broadcast %1 : vector<32x1xf32> to vector<32x256xf32>
    %11 = arith.addf %9, %10 : vector<32x256xf32>
    %cst_11 = arith.constant 0.000000e+00 : f32
    %12 = vector.broadcast %cst_11 : f32 to vector<32x256xf32>
    %13 = arith.cmpf oge, %11, %12 : vector<32x256xf32>
    %cst_12 = arith.constant 2.000000e-01 : f32
    %14 = vector.broadcast %cst_12 : f32 to vector<32x256xf32>
    %15 = arith.mulf %14, %11 : vector<32x256xf32>
    %16 = arith.select %13, %11, %15 : vector<32x256xi1>, vector<32x256xf32>
    %cst_13 = arith.constant 1.41421354 : f32
    %17 = vector.broadcast %cst_13 : f32 to vector<32x256xf32>
    %18 = arith.mulf %16, %17 : vector<32x256xf32>
    %c0_14 = arith.constant 0 : index
    %c0_15 = arith.constant 0 : index
    %c0_16 = arith.constant 0 : index
    %19 = vector.load %arg5[%c0_14, %c0_15, %c0_16] : memref<2x3x32xf32, #tpu.memory_space<vmem>>, vector<1x3x32xf32>
    %20 = vector.shape_cast %19 : vector<1x3x32xf32> to vector<3x32xf32>
    %cst_17 = arith.constant dense<0.000000e+00> : vector<3x256xf32>
    %21 = tpu.matmul %20, %18, %cst_17 {dimension_numbers = #tpu.dot_dimension_numbers<[1], [0], [0], [1], [0, 0, 1, 1], [], []>} : vector<3x32xf32>, vector<32x256xf32>, vector<3x256xf32> -> vector<3x256xf32>
    %22 = vector.broadcast %2 : vector<3x1xf32> to vector<3x256xf32>
    %23 = arith.addf %21, %22 : vector<3x256xf32>
    %c0_18 = arith.constant 0 : index
    %c0_19 = arith.constant 0 : index
    %c0_20 = arith.constant 0 : index
    %24 = vector.load %arg7[%c0_18, %c0_19, %c0_20] : memref<2x3x256xf32, #tpu.memory_space<vmem>>, vector<1x3x256xf32>
    %25 = vector.shape_cast %24 : vector<1x3x256xf32> to vector<3x256xf32>
    %26 = vector.shape_cast %23 : vector<3x256xf32> to vector<1x3x256xf32>
    tpu.vector_store %arg7[%c0_18, %c0_19, %c0_20], %26 {strides = array<i32>} : memref<2x3x256xf32, #tpu.memory_space<vmem>>, vector<1x3x256xf32>,
    %c1 = arith.constant 1 : index
    %c0_21 = arith.constant 0 : index
    %c0_22 = arith.constant 0 : index
    %27 = vector.load %arg2[%c1, %c0_21, %c0_22] : memref<2x32x288xf32, #tpu.memory_space<vmem>>, vector<1x32x288xf32>
    %28 = vector.shape_cast %27 : vector<1x32x288xf32> to vector<32x288xf32>
    %c1_23 = arith.constant 1 : index
    %c0_24 = arith.constant 0 : index
    %c0_25 = arith.constant 0 : index
    %29 = vector.load %arg1[%c1_23, %c0_24, %c0_25] : memref<2x288x256xf32, #tpu.memory_space<vmem>>, vector<1x288x256xf32>
    %30 = vector.shape_cast %29 : vector<1x288x256xf32> to vector<288x256xf32>
    %cst_26 = arith.constant dense<0.000000e+00> : vector<32x256xf32>
    %31 = tpu.matmul %28, %30, %cst_26 {dimension_numbers = #tpu.dot_dimension_numbers<[1], [0], [0], [1], [0, 0, 1, 1], [], []>} : vector<32x288xf32>, vector<288x256xf32>, vector<32x256xf32> -> vector<32x256xf32>
    %32 = vector.broadcast %0 : vector<1x256xf32> to vector<32x256xf32>
    %33 = arith.addf %31, %32 : vector<32x256xf32>
    %34 = vector.broadcast %1 : vector<32x1xf32> to vector<32x256xf32>
    %35 = arith.addf %33, %34 : vector<32x256xf32>
    %cst_27 = arith.constant 0.000000e+00 : f32
    %36 = vector.broadcast %cst_27 : f32 to vector<32x256xf32>
    %37 = arith.cmpf oge, %35, %36 : vector<32x256xf32>
    %cst_28 = arith.constant 2.000000e-01 : f32
    %38 = vector.broadcast %cst_28 : f32 to vector<32x256xf32>
    %39 = arith.mulf %38, %35 : vector<32x256xf32>
    %40 = arith.select %37, %35, %39 : vector<32x256xi1>, vector<32x256xf32>
    %cst_29 = arith.constant 1.41421354 : f32
    %41 = vector.broadcast %cst_29 : f32 to vector<32x256xf32>
    %42 = arith.mulf %40, %41 : vector<32x256xf32>
    %c1_30 = arith.constant 1 : index
    %c0_31 = arith.constant 0 : index
    %c0_32 = arith.constant 0 : index
    %43 = vector.load %arg5[%c1_30, %c0_31, %c0_32] : memref<2x3x32xf32, #tpu.memory_space<vmem>>, vector<1x3x32xf32>
    %44 = vector.shape_cast %43 : vector<1x3x32xf32> to vector<3x32xf32>
    %cst_33 = arith.constant dense<0.000000e+00> : vector<3x256xf32>
    %45 = tpu.matmul %44, %42, %cst_33 {dimension_numbers = #tpu.dot_dimension_numbers<[1], [0], [0], [1], [0, 0, 1, 1], [], []>} : vector<3x32xf32>, vector<32x256xf32>, vector<3x256xf32> -> vector<3x256xf32>
    %46 = vector.broadcast %2 : vector<3x1xf32> to vector<3x256xf32>
    %47 = arith.addf %45, %46 : vector<3x256xf32>
    %c1_34 = arith.constant 1 : index
    %c0_35 = arith.constant 0 : index
    %c0_36 = arith.constant 0 : index
    %48 = vector.load %arg7[%c1_34, %c0_35, %c0_36] : memref<2x3x256xf32, #tpu.memory_space<vmem>>, vector<1x3x256xf32>
    %49 = vector.shape_cast %48 : vector<1x3x256xf32> to vector<3x256xf32>
    %50 = vector.shape_cast %47 : vector<3x256xf32> to vector<1x3x256xf32>
    tpu.vector_store %arg7[%c1_34, %c0_35, %c0_36], %50 {strides = array<i32>} : memref<2x3x256xf32, #tpu.memory_space<vmem>>, vector<1x3x256xf32>,
    return
  }
  func.func @transform_0(%arg0: i32) -> (i32, i32, i32) {
    %c0_i32 = arith.constant 0 : i32
    %c0_i32_0 = arith.constant 0 : i32
    %c0_i32_1 = arith.constant 0 : i32
    %c0_i32_2 = arith.constant 0 : i32
    return %c0_i32, %c0_i32_0, %c0_i32_1 : i32, i32, i32
  }
  func.func @transform_1(%arg0: i32) -> (i32, i32, i32) {
    %c0_i32 = arith.constant 0 : i32
    %c0_i32_0 = arith.constant 0 : i32
    %c0_i32_1 = arith.constant 0 : i32
    %c0_i32_2 = arith.constant 0 : i32
    return %c0_i32, %c0_i32_0, %c0_i32_1 : i32, i32, i32
  }
  func.func @transform_2(%arg0: i32) -> (i32, i32) {
    %c0_i32 = arith.constant 0 : i32
    %c0_i32_0 = arith.constant 0 : i32
    %c0_i32_1 = arith.constant 0 : i32
    return %c0_i32, %c0_i32_0 : i32, i32
  }
  func.func @transform_3(%arg0: i32) -> (i32, i32) {
    %c0_i32 = arith.constant 0 : i32
    %c0_i32_0 = arith.constant 0 : i32
    %c0_i32_1 = arith.constant 0 : i32
    return %c0_i32, %c0_i32_0 : i32, i32
  }
  func.func @transform_4(%arg0: i32) -> (i32, i32, i32) {
    %c0_i32 = arith.constant 0 : i32
    %c0_i32_0 = arith.constant 0 : i32
    %c0_i32_1 = arith.constant 0 : i32
    %c0_i32_2 = arith.constant 0 : i32
    return %c0_i32, %c0_i32_0, %c0_i32_1 : i32, i32, i32
  }
  func.func @transform_5(%arg0: i32) -> (i32, i32) {
    %c0_i32 = arith.constant 0 : i32
    %c0_i32_0 = arith.constant 0 : i32
    %c0_i32_1 = arith.constant 0 : i32
    return %c0_i32, %c0_i32_0 : i32, i32
  }
  func.func @transform_6(%arg0: i32) -> (i32, i32, i32) {
    %c0_i32 = arith.constant 0 : i32
    %c0_i32_0 = arith.constant 0 : i32
    %c0_i32_1 = arith.constant 0 : i32
    %c0_i32_2 = arith.constant 0 : i32
    return %c0_i32, %c0_i32_0, %c0_i32_1 : i32, i32, i32
  }
}

</mosaic_0001>

<bundles_post_ra>
// kernel: tpu_custom_call.1
= control target key start
LH: loop header
LB: loop body
LE: loop exit
PB: predicated region body
PF: predicated region fallthrough
CT: control target
= control target key end

     0   :  { %11 = vsyncpa [#allocation3], 0  ;;  %s1134_s0 = inlined_call_operand.hbm [shape: f32[2,288,256], index: 0, kind: input, shape index: {}]   ;;  %s1135_s1 = inlined_call_operand.hbm [shape: f32[2,32,288], index: 1, kind: input, shape index: {}]   ;;  %s1136_s2 = inlined_call_operand.vmem [shape: f32[1,256], index: 2, kind: input, shape index: {}]   ;;  %s1137_s3 = inlined_call_operand.vmem [shape: f32[32,1], index: 3, kind: input, shape index: {}]   ;;  %s1138_s4 = inlined_call_operand.vmem [shape: f32[2,3,32], index: 4, kind: input, shape index: {}]   ;;  %s1139_s5 = inlined_call_operand.vmem [shape: f32[3,1], index: 5, kind: input, shape index: {}]   ;;  %s1140_s6 = inlined_call_operand.vmem [shape: f32[2,3,256], index: 6, kind: output, shape index: {}]  }
   0x1   :  { %s17_s23 = sshll.u32 %s1134_s0, 4  ;;  %s18_s23 = int_to_ptr.hbm [resolvable:$true] %s17_s23 }
   0x2   :  { %12 = vsyncpa [#allocation5], 0  ;;  %s907_s24 = smov [#allocation2]   ;;  %s30_s28 = sshll.u32 %s1135_s1, 4  ;;  %s31_s28 = int_to_ptr.hbm [resolvable:$true] %s30_s28 }
   0x3   :  { %s19_s25 = sshll.u32 %s907_s24, 4  ;;  %s908_s29 = smov 256   ;;  %s20_s25 = int_to_ptr.vmem [resolvable:$true] %s19_s25 }
   0x4   :  { %s909_s30 = smov 16   ;;  %s910_s7 = smov [#allocation4]  }
   0x5   :  { %25 = dma.hbm_to_vmem [thread:$0]  %s18_s23, 18432, %s20_s25, [#allocation3], %s908_s29, %s908_s29, %s909_s30  }
   0x6   :  { %s32_s8 = sshll.u32 %s910_s7, 4  ;;  %s911_s9 = smov 384   ;;  %s33_s8 = int_to_ptr.vmem [resolvable:$true] %s32_s8 }
   0x7   :  { %s912_s10 = smov 24  }
   0x8   :  { %38 = dma.hbm_to_vmem [thread:$0]  %s31_s28, 3072, %s33_s8, [#allocation5], %s911_s9, %s911_s9, %s912_s10  }
   0x9   :  { %903 = dma.done.wait [#allocation3], 18432  }
   0xa   :  { %904 = vsyncadd [#allocation3], 4294948864 }
   0xb   :  { %905 = dma.done.wait [#allocation5], 3072  }
   0xc   :  { %906 = vsyncadd [#allocation5], 4294964224  ;;  %v103_v0 = vld [vmem:[#allocation2 + $0xf0] sm:$0xff]  ;;  %v101_v1 = vld [vmem:[#allocation2 + $0xe0] sm:$0xff]  ;;  %v913_v6 = vmov 0   ;;  %vm150_vm0 = vcmask 261120  }
   0xd   :  { %v135_v2 = vld [vmem:[#allocation2 + $0x1f0] sm:$0xff]  ;;  %163 = vmatpush.msra.mxu0 %v103_v0  ;;  %v133_v3 = vld [vmem:[#allocation2 + $0x1e0] sm:$0xff]  ;;  %853 = vset.pattern.permute.xlu1 %v913_v6  ;;  %v104_v17 = vld [vmem:[#allocation2 + $0xf8] sm:$0xff]  ;;  %vm449_vm9 = vcmask 1043456  }
   0xe   :  { %192 = vmatpush.msra.mxu1 %v135_v2  ;;  %v99_v4 = vld [vmem:[#allocation2 + $0xd0] sm:$0xff]  ;;  %852 = vset.pattern.permute.xlu0 %v913_v6  ;;  %v97_v7 = vld [vmem:[#allocation2 + $0xc0] sm:$0xff]  ;;  %v102_v20 = vld [vmem:[#allocation2 + $0xe8] sm:$0xff] }
   0xf   :  { %v131_v5 = vld [vmem:[#allocation2 + $0x1d0] sm:$0xff]  ;;  %164 = vmatpush.msra.mxu0 %v101_v1  ;;  %v129_v8 = vld [vmem:[#allocation2 + $0x1c0] sm:$0xff]  ;;  %854 = vset.pattern.permute.xlu2 %v913_v6  ;;  %v100_v22 = vld [vmem:[#allocation2 + $0xd8] sm:$0xff] }
  0x10   :  { %193 = vmatpush.msra.mxu1 %v133_v3  ;;  %v143_v9 = vld [vmem:[#allocation2 + $0x230] sm:$0xff]  ;;  %v141_v12 = vld [vmem:[#allocation2 + $0x220] sm:$0xff]  ;;  %250 = vmatpush.msra.mxu3 %v104_v17  ;;  %v136_v25 = vld [vmem:[#allocation2 + $0x1f8] sm:$0xff] }
  0x11   :  { %165 = vmatpush.msra.mxu0 %v99_v4  ;;  %v95_v10 = vld [vmem:[#allocation2 + $0xb0] sm:$0xff]  ;;  %233 = vmatpush.msra.mxu2 %v143_v9  ;;  %v93_v14 = vld [vmem:[#allocation2 + $0xa0] sm:$0xff]  ;;  %v98_v26 = vld [vmem:[#allocation2 + $0xc8] sm:$0xff] }
  0x12   :  { %194 = vmatpush.msra.mxu1 %v131_v5  ;;  %v127_v11 = vld [vmem:[#allocation2 + $0x1b0] sm:$0xff]  ;;  %v125_v15 = vld [vmem:[#allocation2 + $0x1a0] sm:$0xff]  ;;  %251 = vmatpush.msra.mxu3 %v102_v20  ;;  %v134_v29 = vld [vmem:[#allocation2 + $0x1e8] sm:$0xff] }
  0x13   :  { %166 = vmatpush.msra.mxu0 %v97_v7  ;;  %v139_v13 = vld [vmem:[#allocation2 + $0x210] sm:$0xff]  ;;  %234 = vmatpush.msra.mxu2 %v141_v12  ;;  %v137_v16 = vld [vmem:[#allocation2 + $0x200] sm:$0xff]  ;;  %v96_v30 = vld [vmem:[#allocation2 + $0xb8] sm:$0xff] }
  0x14   :  { %195 = vmatpush.msra.mxu1 %v129_v8  ;;  %v91_v18 = vld [vmem:[#allocation2 + $0x90] sm:$0xff]  ;;  %v89_v23 = vld [vmem:[#allocation2 + $0x80] sm:$0xff]  ;;  %252 = vmatpush.msra.mxu3 %v100_v22  ;;  %v132_v33 = vld [vmem:[#allocation2 + $0x1d8] sm:$0xff] }
  0x15   :  { %167 = vmatpush.msra.mxu0 %v95_v10  ;;  %v123_v19 = vld [vmem:[#allocation2 + $0x190] sm:$0xff]  ;;  %235 = vmatpush.msra.mxu2 %v139_v13  ;;  %v121_v24 = vld [vmem:[#allocation2 + $0x180] sm:$0xff]  ;;  %v94_v34 = vld [vmem:[#allocation2 + $0xa8] sm:$0xff] }
  0x16   :  { %196 = vmatpush.msra.mxu1 %v127_v11  ;;  %v955_v21 = vld [vmem:[#allocation4 + $0x10] sm:$0xff]  ;;  %v85_v31 = vld [vmem:[#allocation2 + $0x60] sm:$0xff]  ;;  %253 = vmatpush.msra.mxu3 %v98_v26  ;;  %v130_v37 = vld [vmem:[#allocation2 + $0x1c8] sm:$0xff] }
  0x17   :  { %168 = vmatpush.msra.mxu0 %v93_v14  ;;  %236 = vmatpush.msra.mxu2 %v137_v16  ;;  %v87_v27 = vld [vmem:[#allocation2 + $0x70] sm:$0xff]  ;;  %v117_v32 = vld [vmem:[#allocation2 + $0x160] sm:$0xff]  ;;  %v92_v38 = vld [vmem:[#allocation2 + $0x98] sm:$0xff] }
  0x18   :  { %197 = vmatpush.msra.mxu1 %v125_v15  ;;  %v119_v28 = vld [vmem:[#allocation2 + $0x170] sm:$0xff]  ;;  %823 = vmatmul.msk.f32.vlgmr.msra.gmra.mxu2 %vm150_vm0, %v955_v21  ;;  %v81_v39 = vld [vmem:[#allocation2 + $0x40] sm:$0xff]  ;;  %v959_v41 = vld [vmem:[#allocation4 + $0x28] sm:$0xff] }
  0x19   :  { %169 = vmatpush.msra.mxu0 %v91_v18  ;;  %279 = vmatpush.msrb.mxu2 %v136_v25  ;;  %v83_v35 = vld [vmem:[#allocation2 + $0x50] sm:$0xff]  ;;  %v113_v40 = vld [vmem:[#allocation2 + $0x140] sm:$0xff]  ;;  %v90_v42 = vld [vmem:[#allocation2 + $0x88] sm:$0xff] }
  0x1a   :  { %198 = vmatpush.msra.mxu1 %v123_v19  ;;  %v115_v36 = vld [vmem:[#allocation2 + $0x150] sm:$0xff]  ;;  %254 = vmatpush.msra.mxu3 %v96_v30  ;;  %v128_v45 = vld [vmem:[#allocation2 + $0x1b8] sm:$0xff]  ;;  %v77_v47 = vld [vmem:[#allocation2 + $0x20] sm:$0xff] }
  0x1b   :  { %170 = vmatpush.msra.mxu0 %v89_v23  ;;  %280 = vmatpush.msrb.mxu2 %v134_v29  ;;  %v79_v43 = vld [vmem:[#allocation2 + $0x30] sm:$0xff]  ;;  %v88_v46 = vld [vmem:[#allocation2 + $0x78] sm:$0xff]  ;;  %v109_v48 = vld [vmem:[#allocation2 + $0x120] sm:$0xff] }
  0x1c   :  { %199 = vmatpush.msra.mxu1 %v121_v24  ;;  %255 = vmatpush.msra.mxu3 %v94_v34  ;;  %v111_v44 = vld [vmem:[#allocation2 + $0x130] sm:$0xff]  ;;  %v126_v49 = vld [vmem:[#allocation2 + $0x1a8] sm:$0xff]  ;;  %v124_v53 = vld [vmem:[#allocation2 + $0x198] sm:$0xff] }
  0x1d   :  { %171 = vmatpush.msra.mxu0 %v87_v27  ;;  %281 = vmatpush.msrb.mxu2 %v132_v33  ;;  %v86_v50 = vld [vmem:[#allocation2 + $0x68] sm:$0xff]  ;;  %v75_v51 = vld [vmem:[#allocation2 + $0x10] sm:$0xff]  ;;  %v73_v55 = vld [vmem:[#allocation2] sm:$0xff] }
  0x1e   :  { %200 = vmatpush.msra.mxu1 %v119_v28  ;;  %256 = vmatpush.msra.mxu3 %v92_v38  ;;  %v107_v52 = vld [vmem:[#allocation2 + $0x110] sm:$0xff]  ;;  %v57_v54 = vld [vmem:[%s1137_s3 + $0x8] sm:$0xff]  ;;  %v105_v56 = vld [vmem:[#allocation2 + $0x100] sm:$0xff] }
  0x1f   :  { %172 = vmatpush.msra.mxu0 %v85_v31  ;;  %282 = vmatpush.msrb.mxu2 %v130_v37  ;;  %v61_v57 = vld [vmem:[#allocation4] sm:$0xff]  ;;  %v966_v58 = vld [vmem:[#allocation4 + $0x8] sm:$0xff]  ;;  %v84_v60 = vld [vmem:[#allocation2 + $0x58] sm:$0xff] }
  0x20   :  { %201 = vmatpush.msra.mxu1 %v117_v32  ;;  %824 = vmatmul.msk.f32.gmra.mxu2 %vm150_vm0, %v959_v41  ;;  %v122_v59 = vld [vmem:[#allocation2 + $0x188] sm:$0xff]  ;;  %v968_v61 = vld [vmem:[#allocation4 + $0x40] sm:$0xff]  ;;  %v144_v62 = vld [vmem:[#allocation2 + $0x238] sm:$0xff] }
  0x21   :  { %173 = vmatpush.msra.mxu0 %v83_v35  ;;  %257 = vmatpush.msra.mxu3 %v90_v42  ;;  %v120_v63 = vld [vmem:[#allocation2 + $0x178] sm:$0xff]  ;;  %v82_v0 = vld [vmem:[#allocation2 + $0x48] sm:$0xff]  ;;  %v56_v5 = vld [vmem:[%s1137_s3] sm:$0xff] }
  0x22   :  { %202 = vmatpush.msra.mxu1 %v115_v36  ;;  %283 = vmatpush.msrb.mxu2 %v128_v45  ;;  %v59_v1 = vld [vmem:[%s1137_s3 + $0x18] sm:$0xff]  ;;  %v142_v2 = vld [vmem:[#allocation2 + $0x228] sm:$0xff]  ;;  %v65_v10 = vld [vmem:[#allocation4 + $0x20] sm:$0xff] }
  0x23   :  { %174 = vmatpush.msra.mxu0 %v81_v39  ;;  %258 = vmatpush.msra.mxu3 %v88_v46  ;;  %v118_v3 = vld [vmem:[#allocation2 + $0x168] sm:$0xff]  ;;  %v80_v4 = vld [vmem:[#allocation2 + $0x38] sm:$0xff]  ;;  %v58_v17 = vld [vmem:[%s1137_s3 + $0x10] sm:$0xff] }
  0x24   :  { %203 = vmatpush.msra.mxu1 %v113_v40  ;;  %284 = vmatpush.msrb.mxu2 %v126_v49  ;;  %v140_v6 = vld [vmem:[#allocation2 + $0x218] sm:$0xff]  ;;  %v78_v8 = vld [vmem:[#allocation2 + $0x28] sm:$0xff]  ;;  %v67_v20 = vld [vmem:[#allocation4 + $0x30] sm:$0xff] }
  0x25   :  { %175 = vmatpush.msra.mxu0 %v79_v43  ;;  %259 = vmatpush.msra.mxu3 %v86_v50  ;;  %v116_v7 = vld [vmem:[#allocation2 + $0x158] sm:$0xff]  ;;  %v114_v11 = vld [vmem:[#allocation2 + $0x148] sm:$0xff]  ;;  %v71_v25 = vld [vmem:[#allocation4 + $0x50] sm:$0xff] }
  0x26   :  { %204 = vmatpush.msra.mxu1 %v111_v44  ;;  %285 = vmatpush.msrb.mxu2 %v124_v53  ;;  %v64_v9 = vld [vmem:[#allocation4 + $0x18] sm:$0xff]  ;;  %v138_v14 = vld [vmem:[#allocation2 + $0x208] sm:$0xff]  ;;  %v497_v26 = vld [vmem:[#allocation2 + $0x330] sm:$0xff] }
  0x27   :  { %176 = vmatpush.msra.mxu0 %v77_v47  ;;  %344 = vperm.xlu1 %853, %v57_v54   ;;  %v76_v12 = vld [vmem:[#allocation2 + $0x18] sm:$0xff]  ;;  %v74_v16 = vld [vmem:[#allocation2 + $0x8] sm:$0xff]  ;;  %v495_v27 = vld [vmem:[#allocation2 + $0x320] sm:$0xff] }
  0x28   :  { %205 = vmatpush.msra.mxu1 %v109_v48  ;;  %286 = vmatpush.msrb.mxu2 %v122_v59  ;;  %v72_v13 = vld [vmem:[#allocation4 + $0x58] sm:$0xff]  ;;  %v110_v18 = vld [vmem:[#allocation2 + $0x128] sm:$0xff]  ;;  %v493_v28 = vld [vmem:[#allocation2 + $0x310] sm:$0xff] }
  0x29   :  { %177 = vmatpush.msra.mxu0 %v75_v51  ;;  %260 = vmatpush.msra.mxu3 %v84_v60  ;;  %v112_v15 = vld [vmem:[#allocation2 + $0x138] sm:$0xff]  ;;  %v106_v23 = vld [vmem:[#allocation2 + $0x108] sm:$0xff]  ;;  %v491_v29 = vld [vmem:[#allocation2 + $0x300] sm:$0xff] }
  0x2a   :  { %206 = vmatpush.msra.mxu1 %v107_v52  ;;  %825 = vmatmul.msk.f32.gmra.mxu2 %vm150_vm0, %v968_v61  ;;  %v108_v19 = vld [vmem:[#allocation2 + $0x118] sm:$0xff]  ;;  %v70_v24 = vld [vmem:[#allocation4 + $0x48] sm:$0xff]  ;;  %v529_v30 = vld [vmem:[#allocation2 + $0x430] sm:$0xff] }
  0x2b   :  { %178 = vmatpush.msra.mxu0 %v73_v55  ;;  %287 = vmatpush.msrb.mxu2 %v120_v63  ;;  %v68_v22 = vld [vmem:[#allocation4 + $0x38] sm:$0xff]  ;;  %v487_v32 = vld [vmem:[#allocation2 + $0x2e0] sm:$0xff]  ;;  %v485_v34 = vld [vmem:[#allocation2 + $0x2d0] sm:$0xff] }
  0x2c   :  { %207 = vmatpush.msra.mxu1 %v105_v56  ;;  %179 = vmatmul.f32.vlgmr.msra.gmra.mxu0 %v61_v57  ;;  %v527_v33 = vld [vmem:[#allocation2 + $0x420] sm:$0xff]  ;;  %v525_v35 = vld [vmem:[#allocation2 + $0x410] sm:$0xff] }
  0x2d   :  { %208 = vmatmul.f32.vlgmr.msra.gmra.mxu1 %v966_v58  ;;  %320 = vmatpush.msrb.mxu0 %v144_v62  ;;  %v483_v36 = vld [vmem:[#allocation2 + $0x2c0] sm:$0xff]  ;;  %v481_v38 = vld [vmem:[#allocation2 + $0x2b0] sm:$0xff] }
  0x2e   :  { %261 = vmatpush.msra.mxu3 %v82_v0  ;;  %354 = vperm.xlu0 %852, %v59_v1   ;;  %v523_v37 = vld [vmem:[#allocation2 + $0x400] sm:$0xff]  ;;  %v521_v39 = vld [vmem:[#allocation2 + $0x3f0] sm:$0xff] }
  0x2f   :  { %321 = vmatpush.msrb.mxu0 %v142_v2  ;;  %288 = vmatpush.msrb.mxu2 %v118_v3  ;;  %v479_v40 = vld [vmem:[#allocation2 + $0x2a0] sm:$0xff]  ;;  %v477_v43 = vld [vmem:[#allocation2 + $0x290] sm:$0xff] }
  0x30   :  { %262 = vmatpush.msra.mxu3 %v80_v4  ;;  %339 = vperm.xlu1 %853, %v56_v5   ;;  %v517_v44 = vld [vmem:[#allocation2 + $0x3d0] sm:$0xff]  ;;  %v475_v47 = vld [vmem:[#allocation2 + $0x280] sm:$0xff] }
  0x31   :  { %322 = vmatpush.msrb.mxu0 %v140_v6  ;;  %289 = vmatpush.msrb.mxu2 %v116_v7  ;;  %v515_v48 = vld [vmem:[#allocation2 + $0x3c0] sm:$0xff]  ;;  %v473_v49 = vld [vmem:[#allocation2 + $0x270] sm:$0xff] }
  0x32   :  { %263 = vmatpush.msra.mxu3 %v78_v8  ;;  %826 = vmatmul.msk.f32.gmra.mxu2 %vm150_vm0, %v72_v13  ;;  %v513_v50 = vld [vmem:[#allocation2 + $0x3b0] sm:$0xff]  ;;  %v471_v51 = vld [vmem:[#allocation2 + $0x260] sm:$0xff] }
  0x33   :  { %290 = vmatpush.msrb.mxu2 %v114_v11  ;;  %323 = vmatpush.msrb.mxu0 %v138_v14  ;;  %v511_v52 = vld [vmem:[#allocation2 + $0x3a0] sm:$0xff]  ;;  %v469_v53 = vld [vmem:[#allocation2 + $0x250] sm:$0xff]  ;;  %v1012_v11 = vld [vmem:[#allocation4 + $0x78] sm:$0xff] }
  0x34   :  { %182 = vmatmul.f32.gmra.mxu0 %v64_v9  ;;  %264 = vmatpush.msra.mxu3 %v76_v12  ;;  %v509_v54 = vld [vmem:[#allocation2 + $0x390] sm:$0xff]  ;;  %v507_v59 = vld [vmem:[#allocation2 + $0x380] sm:$0xff]  ;;  %v1014_v12 = vld [vmem:[#allocation4 + $0x68] sm:$0xff] }
  0x35   :  { %211 = vmatmul.f32.gmra.mxu1 %v65_v10  ;;  %291 = vmatpush.msrb.mxu2 %v112_v15  ;;  %v993_v60 = vld [vmem:[#allocation4 + $0x60] sm:$0xff]  ;;  %v501_v2 = vld [vmem:[#allocation2 + $0x350] sm:$0xff] }
  0x36   :  { %265 = vmatpush.msra.mxu3 %v74_v16  ;;  %349 = vperm.xlu0 %852, %v58_v17   ;;  %v999_v62 = vld [vmem:[%s1136_s2] sm:$0x3] }
  0x37   :  { %266 = vmatmul.f32.vlgmr.msra.gmra.mxu3 %v61_v57  ;;  %292 = vmatpush.msrb.mxu2 %v110_v18  ;;  %v503_v0 = vld [vmem:[#allocation2 + $0x360] sm:$0xff]  ;;  %v1004_v1 = vperm.slane %v999_v62, 0 }
  0x38   :  { %580 = vmatpush.msra.mxu0 %v529_v30  ;;  %v499_v8 = vld [vmem:[#allocation2 + $0x340] sm:$0xff] }
  0x39   :  { %293 = vmatpush.msrb.mxu2 %v108_v19 }
  0x3a   :  { %581 = vmatpush.msra.mxu0 %v527_v33 }
  0x3b   :  { %294 = vmatpush.msrb.mxu2 %v106_v23 }
  0x3c   :  { %185 = vmatmul.f32.gmra.mxu0 %v67_v20  ;;  %295 = vmatmul.f32.vlgmr.msrb.gmra.mxu2 %v966_v58  ;;  %v467_v58 = vld [vmem:[#allocation2 + $0x240] sm:$0xff] }
  0x3d   :  { %214 = vmatmul.f32.gmra.mxu1 %v68_v22  ;;  %551 = vmatpush.msra.mxu2 %v497_v26  ;;  %v1024_v26 = vld [vmem:[#allocation4 + $0x90] sm:$0xff] }
  0x3e   :  { %582 = vmatpush.msra.mxu0 %v525_v35 }
  0x3f   :  { %269 = vmatmul.f32.gmra.mxu3 %v64_v9  ;;  %552 = vmatpush.msra.mxu2 %v495_v27  ;;  %v1026_v27 = vld [vmem:[#allocation4 + $0x80] sm:$0xff] }
  0x40   :  { %583 = vmatpush.msra.mxu0 %v523_v37 }
  0x41   :  { %553 = vmatpush.msra.mxu2 %v493_v28 }
  0x42   :  { %584 = vmatpush.msra.mxu0 %v521_v39 }
  0x43   :  { %554 = vmatpush.msra.mxu2 %v491_v29 }
  0x44   :  { %188 = vmatmul.f32.gmra.mxu0 %v70_v24  ;;  %298 = vmatmul.f32.gmra.mxu2 %v65_v10 }
  0x45   :  { %217 = vmatmul.f32.gmra.mxu1 %v71_v25 }
  0x47   :  { %272 = vmatmul.f32.gmra.mxu3 %v67_v20 }
  0x4c   :  { %827 = vmatmul.msk.f32.vlgmr.msrb.gmra.mxu0 %vm150_vm0, %v955_v21  ;;  %301 = vmatmul.f32.gmra.mxu2 %v68_v22  ;;  %v489_v21 = vld [vmem:[#allocation2 + $0x2f0] sm:$0xff] }
  0x4d   :  { %555 = vmatpush.msra.mxu2 %v489_v21 }
  0x4f   :  { %275 = vmatmul.f32.gmra.mxu3 %v70_v24  ;;  %556 = vmatpush.msra.mxu2 %v487_v32 }
  0x51   :  { %557 = vmatpush.msra.mxu2 %v485_v34 }
  0x53   :  { %558 = vmatpush.msra.mxu2 %v483_v36 }
  0x54   :  { %828 = vmatmul.msk.f32.gmra.mxu0 %vm150_vm0, %v959_v41  ;;  %304 = vmatmul.f32.gmra.mxu2 %v71_v25  ;;  %v519_v41 = vld [vmem:[#allocation2 + $0x3e0] sm:$0xff] }
  0x55   :  { %559 = vmatpush.msra.mxu2 %v481_v38  ;;  %585 = vmatpush.msra.mxu0 %v519_v41  ;;  %v1039_v41 = vld [vmem:[#allocation4 + $0x98] sm:$0xff] }
  0x57   :  { %560 = vmatpush.msra.mxu2 %v479_v40  ;;  %586 = vmatpush.msra.mxu0 %v517_v44  ;;  %v1037_v40 = vld [vmem:[#allocation4 + $0xa8] sm:$0xff] }
  0x59   :  { %561 = vmatpush.msra.mxu2 %v477_v43  ;;  %587 = vmatpush.msra.mxu0 %v515_v48 }
  0x5b   :  { %562 = vmatpush.msra.mxu2 %v475_v47  ;;  %588 = vmatpush.msra.mxu0 %v513_v50 }
  0x5c   :  { %829 = vmatmul.msk.f32.gmra.mxu0 %vm150_vm0, %v968_v61  ;;  %v505_v61 = vld [vmem:[#allocation2 + $0x370] sm:$0xff] }
  0x5d   :  { %563 = vmatpush.msra.mxu2 %v473_v49  ;;  %589 = vmatpush.msra.mxu0 %v511_v52  ;;  %v1044_v52 = vperm.slane %v999_v62, 1 }
  0x5f   :  { %564 = vmatpush.msra.mxu2 %v471_v51  ;;  %590 = vmatpush.msra.mxu0 %v509_v54 }
  0x61   :  { %565 = vmatpush.msra.mxu2 %v469_v53  ;;  %591 = vmatpush.msra.mxu0 %v507_v59 }
  0x63   :  { %566 = vmatpush.msra.mxu2 %v467_v58  ;;  %592 = vmatpush.msra.mxu0 %v505_v61  ;;  %v537_v58 = vld [vmem:[#allocation2 + $0x470] sm:$0xff]  ;;  %v535_v61 = vld [vmem:[#allocation2 + $0x460] sm:$0xff] }
  0x64   :  { %830 = vmatmul.msk.f32.gmra.mxu0 %vm150_vm0, %v72_v13  ;;  %567 = vmatmul.f32.vlgmr.msra.gmra.mxu2 %v993_v60 }
  0x65   :  { %593 = vmatpush.msra.mxu0 %v503_v0 }
  0x67   :  { %594 = vmatpush.msra.mxu0 %v501_v2 }
  0x69   :  { %595 = vmatpush.msra.mxu0 %v499_v8  ;;  %v1061_v8 = vld [vmem:[#allocation4 + $0x70] sm:$0xff] }
  0x6c   :  { %570 = vmatmul.f32.gmra.mxu2 %v1012_v11  ;;  %596 = vmatmul.f32.vlgmr.msra.gmra.mxu0 %v1014_v12 }
  0x74   :  { %573 = vmatmul.f32.gmra.mxu2 %v1024_v26  ;;  %599 = vmatmul.f32.gmra.mxu0 %v1026_v27 }
  0x7c   :  { %576 = vmatmul.f32.gmra.mxu2 %v1037_v40  ;;  %602 = vmatmul.f32.gmra.mxu0 %v1039_v41 }
  0x99   :  { %v1008_v9 = vpop.permute.xlu1 %344 }
  0x9b   :  { %v991_v31 = vpop.f32.mrf.mxu2 }
  0xa0   :  { %v1001_v63 = vpop.permute.xlu0 %354 }
  0xa2   :  { %v1032_v30 = vpop.permute.xlu1 %339 }
  0xa3   :  { %v241_v42 = vpop.f32.mrf.mxu2 }
  0xa8   :  { %v1019_v18 = vpop.permute.xlu0 %349 }
  0xa9   :  { %v180_v45 = vpop.f32.mrf.mxu0 }
  0xaa   :  { %v209_v46 = vpop.f32.mrf.mxu1  ;;  %v181_v13 = vadd.f32 %v180_v45, %v1004_v1 }
  0xac   :  { %v210_v16 = vadd.f32 %v209_v46, %v181_v13 }
  0xad   :  { %v244_v57 = vpop.f32.mrf.mxu2 }
  0xae   :  { %v239_v28 = vadd.f32 %v991_v31, %v210_v16  ;;  %v530_v16 = vld [vmem:[#allocation2 + $0x438] sm:$0xff] }
  0xb0   :  { %v357_v34 = vadd.f32 %v1032_v30, %v239_v28 }
  0xb1   :  { %v183_v55 = vpop.f32.mrf.mxu0 }
  0xb2   :  { %v212_v56 = vpop.f32.mrf.mxu1  ;;  %v184_v5 = vadd.f32 %v183_v55, %v1004_v1  ;;  %v373_v44 = vmul.f32 0.2, %v357_v34  ;;  %vm365_vm4 = vcmp.ge.f32.partialorder %v357_v34, 0.0  ;;  %v1049_v55 = vld [vmem:[%s1138_s4] sm:$0x7] }
  0xb4   :  { %v213_v15 = vadd.f32 %v212_v56, %v184_v5  ;;  %v381_v49 = vsel %vm365_vm4, %v357_v34, %v373_v44  ;;  %v1051_v56 = vld [vmem:[#allocation4 + $0xb0] sm:$0xff] }
  0xb5   :  { %v247_v7 = vpop.f32.mrf.mxu2  ;;  %v389_v54 = vmul.f32 1.4142135, %v381_v49  ;;  %605 = vmatmul.f32.gmra.mxu0 %v1051_v56 }
  0xb6   :  { %v242_v22 = vadd.f32 %v241_v42, %v213_v15 }
  0xb8   :  { %v359_v32 = vadd.f32 %v1008_v9, %v242_v22 }
  0xb9   :  { %v186_v3 = vpop.f32.mrf.mxu0 }
  0xba   :  { %v215_v4 = vpop.f32.mrf.mxu1  ;;  %v187_v6 = vadd.f32 %v186_v3, %v1004_v1  ;;  %v1010_v10 = vpop.f32.mrf.mxu3  ;;  %v375_v39 = vmul.f32 0.2, %v359_v32  ;;  %vm367_vm3 = vcmp.ge.f32.partialorder %v359_v32, 0.0  ;;  %v533_v3 = vld [vmem:[#allocation2 + $0x450] sm:$0xff] }
  0xbb   :  { %v268_v0 = vadd.f32 %v1010_v10, %v1044_v52 }
  0xbc   :  { %v216_v14 = vadd.f32 %v215_v4, %v187_v6  ;;  %v383_v47 = vsel %vm367_vm3, %v359_v32, %v375_v39 }
  0xbd   :  { %v391_v51 = vmul.f32 1.4142135, %v383_v47 }
  0xbe   :  { %v245_v17 = vadd.f32 %v244_v57, %v216_v14 }
  0xbf   :  { %v1022_v24 = vpop.f32.mrf.mxu2 }
  0xc0   :  { %v361_v29 = vadd.f32 %v1019_v18, %v245_v17  ;;  %v297_v14 = vadd.f32 %v1022_v24, %v268_v0  ;;  %v524_v24 = vld [vmem:[#allocation2 + $0x408] sm:$0xff] }
  0xc1   :  { %v189_v19 = vpop.f32.mrf.mxu0  ;;  %v508_v0 = vld [vmem:[#allocation2 + $0x388] sm:$0xff] }
  0xc2   :  { %v218_v20 = vpop.f32.mrf.mxu1  ;;  %v190_v23 = vadd.f32 %v189_v19, %v1004_v1  ;;  %v270_v25 = vpop.f32.mrf.mxu3  ;;  %v377_v36 = vmul.f32 0.2, %v361_v29  ;;  %vm369_vm1 = vcmp.ge.f32.partialorder %v361_v29, 0.0  ;;  %v528_v19 = vld [vmem:[#allocation2 + $0x428] sm:$0xff] }
  0xc3   :  { %v271_v59 = vadd.f32 %v270_v25, %v1044_v52 }
  0xc4   :  { %v219_v21 = vadd.f32 %v218_v20, %v190_v23  ;;  %v385_v43 = vsel %vm369_vm1, %v361_v29, %v377_v36  ;;  %v526_v23 = vld [vmem:[#allocation2 + $0x418] sm:$0xff] }
  0xc5   :  { %v393_v48 = vmul.f32 1.4142135, %v385_v43  ;;  %v518_v43 = vld [vmem:[#allocation2 + $0x3d8] sm:$0xff] }
  0xc6   :  { %v248_v33 = vadd.f32 %v247_v7, %v219_v21  ;;  %v531_v7 = vld [vmem:[#allocation2 + $0x440] sm:$0xff]  ;;  %v1068_v21 = vld [vmem:[#allocation4 + $0x88] sm:$0xff] }
  0xc7   :  { %v299_v31 = vpop.f32.mrf.mxu2 }
  0xc8   :  { %v363_v35 = vadd.f32 %v1001_v63, %v248_v33  ;;  %v300_v5 = vadd.f32 %v299_v31, %v271_v59  ;;  %v520_v31 = vld [vmem:[#allocation2 + $0x3e8] sm:$0xff]  ;;  %v510_v59 = vld [vmem:[#allocation2 + $0x398] sm:$0xff] }
  0xc9   :  { %v325_v37 = vpop.f32.mrf.mxu0 }
  0xca   :  { %vm371_vm2 = vcmp.ge.f32.partialorder %v363_v35, 0.0  ;;  %v379_v38 = vmul.f32 0.2, %v363_v35  ;;  %v273_v46 = vpop.f32.mrf.mxu3  ;;  %v326_v20 = vadd.f32 %v325_v37, %v297_v14  ;;  %v490_v14 = vld [vmem:[#allocation2 + $0x2f8] sm:$0xff] }
  0xcb   :  { %v274_v57 = vadd.f32 %v273_v46, %v1044_v52  ;;  %v516_v46 = vld [vmem:[#allocation2 + $0x3c8] sm:$0xff] }
  0xcc   :  { %v387_v42 = vsel %vm371_vm2, %v363_v35, %v379_v38  ;;  %v358_v32 = vadd.f32 %v1032_v30, %v326_v20  ;;  %v522_v35 = vld [vmem:[#allocation2 + $0x3f8] sm:$0xff] }
  0xcd   :  { %v395_v45 = vmul.f32 1.4142135, %v387_v42  ;;  %v482_v20 = vld [vmem:[#allocation2 + $0x2b8] sm:$0xff] }
  0xce   :  { %v374_v42 = vmul.f32 0.2, %v358_v32  ;;  %vm366_vm8 = vcmp.ge.f32.partialorder %v358_v32, 0.0 }
  0xcf   :  { %418 = vmatpush.msrb.mxu1 %v395_v45  ;;  %v302_v53 = vpop.f32.mrf.mxu2 }
  0xd0   :  { %v303_v2 = vadd.f32 %v302_v53, %v274_v57  ;;  %v382_v49 = vsel %vm366_vm8, %v358_v32, %v374_v42  ;;  %v512_v53 = vld [vmem:[#allocation2 + $0x3a8] sm:$0xff] }
  0xd1   :  { %v328_v50 = vpop.f32.mrf.mxu0  ;;  %419 = vmatpush.msrb.mxu1 %v393_v48  ;;  %v1074_v48 = vld [vmem:[#allocation4 + $0xa0] sm:$0xff]  ;;  %v390_v57 = vmul.f32 1.4142135, %v382_v49 }
  0xd2   :  { %v276_v62 = vpop.f32.mrf.mxu3  ;;  %v329_v17 = vadd.f32 %v328_v50, %v300_v5  ;;  %v514_v50 = vld [vmem:[#allocation2 + $0x3b8] sm:$0xff]  ;;  %v60_v5 = vld [vmem:[%s1139_s5] sm:$0x7] }
  0xd3   :  { %420 = vmatpush.msrb.mxu1 %v391_v51  ;;  %v277_v6 = vadd.f32 %v276_v62, %v1044_v52  ;;  %v496_v62 = vld [vmem:[#allocation2 + $0x328] sm:$0xff]  ;;  %400 = vperm.xlu2 %854, %v60_v5  }
  0xd4   :  { %v360_v28 = vadd.f32 %v1008_v9, %v329_v17  ;;  %v500_v17 = vld [vmem:[#allocation2 + $0x348] sm:$0xff] }
  0xd5   :  { %421 = vmatpush.msrb.mxu1 %v389_v54  ;;  %v538_v54 = vld [vmem:[#allocation2 + $0x478] sm:$0xff] }
  0xd6   :  { %831 = vmatmul.msk.f32.vlgmr.msrb.gmra.mxu1 %vm150_vm0, %v1049_v55  ;;  %v376_v37 = vmul.f32 0.2, %v360_v28  ;;  %vm368_vm7 = vcmp.ge.f32.partialorder %v360_v28, 0.0  ;;  %708 = vmatpush.msrb.mxu2 %v538_v54 }
  0xd7   :  { %621 = vmatpush.msra.mxu1 %v537_v58  ;;  %v305_v13 = vpop.f32.mrf.mxu2  ;;  %v498_v58 = vld [vmem:[#allocation2 + $0x338] sm:$0xff] }
  0xd8   :  { %v306_v10 = vadd.f32 %v305_v13, %v277_v6  ;;  %v384_v45 = vsel %vm368_vm7, %v360_v28, %v376_v37  ;;  %v494_v6 = vld [vmem:[#allocation2 + $0x318] sm:$0xff]  ;;  %v504_v13 = vld [vmem:[#allocation2 + $0x368] sm:$0xff] }
  0xd9   :  { %v331_v4 = vpop.f32.mrf.mxu0  ;;  %622 = vmatpush.msra.mxu1 %v535_v61  ;;  %v392_v51 = vmul.f32 1.4142135, %v384_v45  ;;  %v536_v61 = vld [vmem:[#allocation2 + $0x468] sm:$0xff]  ;;  %v470_v28 = vld [vmem:[#allocation2 + $0x258] sm:$0xff] }
  0xda   :  { %v332_v15 = vadd.f32 %v331_v4, %v303_v2  ;;  %709 = vmatpush.msrb.mxu2 %v536_v61  ;;  %v534_v2 = vld [vmem:[#allocation2 + $0x458] sm:$0xff]  ;;  %v532_v4 = vld [vmem:[#allocation2 + $0x448] sm:$0xff] }
  0xdb   :  { %623 = vmatpush.msra.mxu1 %v533_v3  ;;  %v465_v3 = vld [vmem:[#allocation4 + $0xb8] sm:$0xff] }
  0xdc   :  { %v362_v22 = vadd.f32 %v1019_v18, %v332_v15  ;;  %710 = vmatpush.msrb.mxu2 %v534_v2  ;;  %v502_v15 = vld [vmem:[#allocation2 + $0x358] sm:$0xff] }
  0xdd   :  { %624 = vmatpush.msra.mxu1 %v531_v7  ;;  %v506_v7 = vld [vmem:[#allocation2 + $0x378] sm:$0xff] }
  0xde   :  { %833 = vmatmul.msk.f32.vlgmr.msra.gmra.mxu1 %vm150_vm0, %v1061_v8  ;;  %v378_v34 = vmul.f32 0.2, %v362_v22  ;;  %vm370_vm5 = vcmp.ge.f32.partialorder %v362_v22, 0.0  ;;  %711 = vmatpush.msrb.mxu2 %v532_v4 }
  0xdf   :  { %667 = vmatpush.msrb.mxu1 %v530_v16  ;;  %837 = vmatmul.msk.f32.vlgmr.msrb.gmra.mxu2 %vm150_vm0, %v1061_v8  ;;  %v488_v16 = vld [vmem:[#allocation2 + $0x2e8] sm:$0xff] }
  0xe0   :  { %v386_v39 = vsel %vm370_vm5, %v362_v22, %v378_v34  ;;  %v480_v8 = vld [vmem:[#allocation2 + $0x2a8] sm:$0xff]  ;;  %v478_v22 = vld [vmem:[#allocation2 + $0x298] sm:$0xff] }
  0xe1   :  { %v334_v25 = vpop.f32.mrf.mxu0  ;;  %668 = vmatpush.msrb.mxu1 %v528_v19  ;;  %v394_v47 = vmul.f32 1.4142135, %v386_v39  ;;  %v484_v19 = vld [vmem:[#allocation2 + $0x2c8] sm:$0xff] }
  0xe2   :  { %v335_v29 = vadd.f32 %v334_v25, %v306_v10  ;;  %v486_v10 = vld [vmem:[#allocation2 + $0x2d8] sm:$0xff] }
  0xe3   :  { %669 = vmatpush.msrb.mxu1 %v526_v23  ;;  %v476_v23 = vld [vmem:[#allocation2 + $0x288] sm:$0xff]  ;;  %v474_v25 = vld [vmem:[#allocation2 + $0x278] sm:$0xff] }
  0xe4   :  { %v364_v33 = vadd.f32 %v1001_v63, %v335_v29  ;;  %v468_v29 = vld [vmem:[#allocation2 + $0x248] sm:$0xff] }
  0xe5   :  { %670 = vmatpush.msrb.mxu1 %v524_v24 }
  0xe6   :  { %834 = vmatmul.msk.f32.gmra.mxu1 %vm150_vm0, %v1068_v21  ;;  %vm372_vm6 = vcmp.ge.f32.partialorder %v364_v33, 0.0  ;;  %v380_v36 = vmul.f32 0.2, %v364_v33 }
  0xe7   :  { %671 = vmatpush.msrb.mxu1 %v522_v35  ;;  %838 = vmatmul.msk.f32.gmra.mxu2 %vm150_vm0, %v1068_v21 }
  0xe8   :  { %v388_v38 = vsel %vm372_vm6, %v364_v33, %v380_v36 }
  0xe9   :  { %v396_v44 = vmul.f32 1.4142135, %v388_v38  ;;  %672 = vmatpush.msrb.mxu1 %v520_v31  ;;  %v597_v24 = vpop.f32.mrf.mxu0 }
  0xeb   :  { %438 = vmatpush.msrb.mxu3 %v396_v44  ;;  %673 = vmatpush.msrb.mxu1 %v518_v43 }
  0xed   :  { %439 = vmatpush.msrb.mxu3 %v394_v47  ;;  %674 = vmatpush.msrb.mxu1 %v516_v46 }
  0xee   :  { %835 = vmatmul.msk.f32.gmra.mxu1 %vm150_vm0, %v1074_v48 }
  0xef   :  { %440 = vmatpush.msrb.mxu3 %v392_v51  ;;  %675 = vmatpush.msrb.mxu1 %v514_v50 }
  0xf0   :  { %839 = vmatmul.msk.f32.gmra.mxu2 %vm150_vm0, %v1074_v48 }
  0xf1   :  { %441 = vmatpush.msrb.mxu3 %v390_v57  ;;  %676 = vmatpush.msrb.mxu1 %v512_v53  ;;  %v600_v33 = vpop.f32.mrf.mxu0 }
  0xf2   :  { %832 = vmatmul.msk.f32.vlgmr.msrb.gmra.mxu3 %vm150_vm0, %v1049_v55  ;;  %v492_v55 = vld [vmem:[#allocation2 + $0x308] sm:$0xff] }
  0xf3   :  { %638 = vmatpush.msra.mxu3 %v498_v58  ;;  %677 = vmatpush.msrb.mxu1 %v510_v59 }
  0xf5   :  { %639 = vmatpush.msra.mxu3 %v496_v62  ;;  %678 = vmatpush.msrb.mxu1 %v508_v0 }
  0xf6   :  { %836 = vmatmul.msk.f32.gmra.mxu1 %vm150_vm0, %v465_v3 }
  0xf7   :  { %640 = vmatpush.msra.mxu3 %v494_v6  ;;  %679 = vmatpush.msrb.mxu1 %v506_v7 }
  0xf8   :  { %840 = vmatmul.msk.f32.gmra.mxu2 %vm150_vm0, %v465_v3 }
  0xf9   :  { %641 = vmatpush.msra.mxu3 %v492_v55  ;;  %680 = vmatpush.msrb.mxu1 %v504_v13  ;;  %v603_v36 = vpop.f32.mrf.mxu0 }
  0xfb   :  { %642 = vmatpush.msra.mxu3 %v490_v14  ;;  %681 = vmatpush.msrb.mxu1 %v502_v15 }
  0xfd   :  { %643 = vmatpush.msra.mxu3 %v488_v16  ;;  %682 = vmatpush.msrb.mxu1 %v500_v17 }
  0xfe   :  { %683 = vmatmul.f32.vlgmr.msrb.gmra.mxu1 %v1014_v12  ;;  %v472_v12 = vld [vmem:[#allocation2 + $0x268] sm:$0xff] }
  0xff   :  { %644 = vmatpush.msra.mxu3 %v486_v10 }
 0x101   :  { %645 = vmatpush.msra.mxu3 %v484_v19 }
 0x103   :  { %646 = vmatpush.msra.mxu3 %v482_v20 }
 0x105   :  { %647 = vmatpush.msra.mxu3 %v480_v8 }
 0x106   :  { %686 = vmatmul.f32.gmra.mxu1 %v1026_v27  ;;  %v568_v27 = vpop.f32.mrf.mxu2 }
 0x107   :  { %648 = vmatpush.msra.mxu3 %v478_v22  ;;  %v841_v22 = vld [vmem:[%s1138_s4 + $0x4] sm:$0x7] }
 0x109   :  { %649 = vmatpush.msra.mxu3 %v476_v23 }
 0x10b   :  { %650 = vmatpush.msra.mxu3 %v474_v25 }
 0x10d   :  { %651 = vmatpush.msra.mxu3 %v472_v12 }
 0x10e   :  { %689 = vmatmul.f32.gmra.mxu1 %v1039_v41  ;;  %v571_v32 = vpop.f32.mrf.mxu2 }
 0x10f   :  { %652 = vmatpush.msra.mxu3 %v470_v28 }
 0x111   :  { %653 = vmatpush.msra.mxu3 %v468_v29 }
 0x112   :  { %654 = vmatmul.f32.vlgmr.msra.gmra.mxu3 %v993_v60  ;;  %v572_v60 = vadd.f32 %v571_v32, %v1004_v1 }
 0x114   :  { %v601_v38 = vadd.f32 %v600_v33, %v572_v60 }
 0x116   :  { %692 = vmatmul.f32.gmra.mxu1 %v1051_v56  ;;  %v574_v34 = vpop.f32.mrf.mxu2 }
 0x117   :  { %v575_v37 = vadd.f32 %v574_v34, %v1004_v1 }
 0x119   :  { %v604_v31 = vadd.f32 %v603_v36, %v575_v37 }
 0x11a   :  { %657 = vmatmul.f32.gmra.mxu3 %v1012_v11  ;;  %v569_v11 = vadd.f32 %v568_v27, %v1004_v1 }
 0x11c   :  { %v598_v42 = vadd.f32 %v597_v24, %v569_v11 }
 0x11e   :  { %v577_v56 = vpop.f32.mrf.mxu2 }
 0x122   :  { %660 = vmatmul.f32.gmra.mxu3 %v1024_v26 }
 0x12a   :  { %663 = vmatmul.f32.gmra.mxu3 %v1037_v40  ;;  %v578_v40 = vadd.f32 %v577_v56, %v1004_v1 }
 0x12d   :  { %v1105_v50 = vpop.permute.xlu2 %400 }
 0x132   :  { %v606_v39 = vpop.f32.mrf.mxu0 }
 0x133   :  { %v607_v45 = vadd.f32 %v606_v39, %v578_v40 }
 0x153   :  { %v423_v21 = vpop.f32.mrf.mxu1 }
 0x154   :  { %v424_v59 = vadd.f32 %v423_v21, %v1105_v50 }
 0x15b   :  { %v626_v41 = vpop.f32.mrf.mxu1 }
 0x15c   :  { %v627_v46 = vadd.f32 %v626_v41, %v598_v42 }
 0x15e   :  { %v725_v54 = vadd.f32 %v627_v46, %v1032_v30 }
 0x160   :  { %v741_v2 = vmul.f32 0.2, %v725_v54  ;;  %vm733_vm13 = vcmp.ge.f32.partialorder %v725_v54, 0.0 }
 0x162   :  { %v749_v13 = vsel %vm733_vm13, %v725_v54, %v741_v2  ;;  %v713_v17 = vpop.f32.mrf.mxu2 }
 0x163   :  { %v629_v35 = vpop.f32.mrf.mxu1  ;;  %v757_v15 = vmul.f32 1.4142135, %v749_v13 }
 0x164   :  { %v630_v44 = vadd.f32 %v629_v35, %v601_v38 }
 0x166   :  { %v727_v49 = vadd.f32 %v630_v44, %v1008_v9 }
 0x168   :  { %v743_v61 = vmul.f32 0.2, %v727_v49  ;;  %vm735_vm12 = vcmp.ge.f32.partialorder %v727_v49, 0.0 }
 0x16a   :  { %v751_v7 = vsel %vm735_vm12, %v727_v49, %v743_v61  ;;  %v716_v20 = vpop.f32.mrf.mxu2 }
 0x16b   :  { %v632_v26 = vpop.f32.mrf.mxu1  ;;  %v759_v14 = vmul.f32 1.4142135, %v751_v7 }
 0x16c   :  { %v633_v43 = vadd.f32 %v632_v26, %v604_v31 }
 0x16e   :  { %v729_v47 = vadd.f32 %v633_v43, %v1019_v18 }
 0x170   :  { %v745_v57 = vmul.f32 0.2, %v729_v47  ;;  %vm737_vm10 = vcmp.ge.f32.partialorder %v729_v47, 0.0 }
 0x172   :  { %v753_v5 = vsel %vm737_vm10, %v729_v47, %v745_v57 }
 0x173   :  { %v635_v48 = vpop.f32.mrf.mxu1  ;;  %v761_v55 = vmul.f32 1.4142135, %v753_v5  ;;  %v719_v12 = vpop.f32.mrf.mxu2 }
 0x174   :  { %v636_v51 = vadd.f32 %v635_v48, %v607_v45 }
 0x175   :  { %v443_v53 = vpop.f32.mrf.mxu3 }
 0x176   :  { %v731_v1 = vadd.f32 %v636_v51, %v1001_v63  ;;  %v444_v58 = vadd.f32 %v443_v53, %v1105_v50 }
 0x178   :  { %vm739_vm11 = vcmp.ge.f32.partialorder %v731_v1, 0.0  ;;  %v747_v62 = vmul.f32 0.2, %v731_v1  ;;  %v448_v0 = vrot.slane %v444_v58, 4 }
 0x17a   :  { %v755_v3 = vsel %vm739_vm11, %v731_v1, %v747_v62  ;;  %v450_v4 = vsel %vm449_vm9, %v424_v59, %v448_v0 }
 0x17b   :  { %v763_v6 = vmul.f32 1.4142135, %v755_v3  ;;  %452 = vst [vmem:[%s1140_s6] sm:$0x77] %v450_v4  ;;  %v684_v16 = vpop.f32.mrf.mxu1  ;;  %v722_v37 = vpop.f32.mrf.mxu2 }
 0x17d   :  { %782 = vmatpush.msrb.mxu0 %v763_v6 }
 0x17f   :  { %783 = vmatpush.msrb.mxu0 %v761_v55 }
 0x181   :  { %784 = vmatpush.msrb.mxu0 %v759_v14 }
 0x183   :  { %785 = vmatpush.msrb.mxu0 %v757_v15  ;;  %v687_v19 = vpop.f32.mrf.mxu1 }
 0x184   :  { %842 = vmatmul.msk.f32.vlgmr.msrb.gmra.mxu0 %vm150_vm0, %v841_v22 }
 0x18b   :  { %v690_v23 = vpop.f32.mrf.mxu1 }
 0x193   :  { %v693_v34 = vpop.f32.mrf.mxu1 }
 0x195   :  { %v655_v10 = vpop.f32.mrf.mxu3 }
 0x196   :  { %v656_v27 = vadd.f32 %v655_v10, %v1044_v52 }
 0x198   :  { %v685_v32 = vadd.f32 %v684_v16, %v656_v27 }
 0x19a   :  { %v714_v60 = vadd.f32 %v713_v17, %v685_v32 }
 0x19c   :  { %v726_v38 = vadd.f32 %v714_v60, %v1032_v30 }
 0x19d   :  { %v658_v8 = vpop.f32.mrf.mxu3 }
 0x19e   :  { %v659_v28 = vadd.f32 %v658_v8, %v1044_v52  ;;  %v742_v44 = vmul.f32 0.2, %v726_v38  ;;  %vm734_vm2 = vcmp.ge.f32.partialorder %v726_v38, 0.0 }
 0x1a0   :  { %v688_v21 = vadd.f32 %v687_v19, %v659_v28 }
 0x1a2   :  { %v717_v35 = vadd.f32 %v716_v20, %v688_v21 }
 0x1a4   :  { %v728_v31 = vadd.f32 %v717_v35, %v1008_v9  ;;  %v750_v9 = vsel %vm734_vm2, %v726_v38, %v742_v44 }
 0x1a5   :  { %v661_v25 = vpop.f32.mrf.mxu3  ;;  %v758_v30 = vmul.f32 1.4142135, %v750_v9 }
 0x1a6   :  { %v662_v29 = vadd.f32 %v661_v25, %v1044_v52  ;;  %v744_v42 = vmul.f32 0.2, %v728_v31  ;;  %vm736_vm1 = vcmp.ge.f32.partialorder %v728_v31, 0.0 }
 0x1a8   :  { %v691_v24 = vadd.f32 %v690_v23, %v662_v29 }
 0x1aa   :  { %v720_v33 = vadd.f32 %v719_v12, %v691_v24 }
 0x1ac   :  { %v730_v56 = vadd.f32 %v720_v33, %v1019_v18  ;;  %v752_v18 = vsel %vm736_vm1, %v728_v31, %v744_v42 }
 0x1ad   :  { %v664_v41 = vpop.f32.mrf.mxu3  ;;  %v760_v48 = vmul.f32 1.4142135, %v752_v18 }
 0x1ae   :  { %v665_v36 = vadd.f32 %v664_v41, %v1044_v52  ;;  %v746_v40 = vmul.f32 0.2, %v730_v56  ;;  %vm738_vm14 = vcmp.ge.f32.partialorder %v730_v56, 0.0 }
 0x1b0   :  { %v694_v11 = vadd.f32 %v693_v34, %v665_v36  ;;  %v754_v45 = vsel %vm738_vm14, %v730_v56, %v746_v40 }
 0x1b1   :  { %v762_v47 = vmul.f32 1.4142135, %v754_v45 }
 0x1b2   :  { %v723_v26 = vadd.f32 %v722_v37, %v694_v11 }
 0x1b4   :  { %v732_v39 = vadd.f32 %v723_v26, %v1001_v63 }
 0x1b6   :  { %vm740_vm15 = vcmp.ge.f32.partialorder %v732_v39, 0.0  ;;  %v748_v43 = vmul.f32 0.2, %v732_v39 }
 0x1b8   :  { %v756_v52 = vsel %vm740_vm15, %v732_v39, %v748_v43 }
 0x1b9   :  { %v764_v46 = vmul.f32 1.4142135, %v756_v52 }
 0x1bb   :  { %802 = vmatpush.msrb.mxu3 %v764_v46 }
 0x1bd   :  { %803 = vmatpush.msrb.mxu3 %v762_v47 }
 0x1bf   :  { %804 = vmatpush.msrb.mxu3 %v760_v48 }
 0x1c1   :  { %805 = vmatpush.msrb.mxu3 %v758_v30 }
 0x1c2   :  { %843 = vmatmul.msk.f32.vlgmr.msrb.gmra.mxu3 %vm150_vm0, %v841_v22 }
 0x201   :  { %v787_v49 = vpop.f32.mrf.mxu0 }
 0x202   :  { %v788_v54 = vadd.f32 %v787_v49, %v1105_v50 }
 0x245   :  { %v807_v63 = vpop.f32.mrf.mxu3 }
 0x246   :  { %v808_v51 = vadd.f32 %v807_v63, %v1105_v50 }
 0x248   :  { %v812_v53 = vrot.slane %v808_v51, 4 }
 0x24a   :  { %v813_v57 = vsel %vm449_vm9, %v788_v54, %v812_v53 }
 0x24b   :  { %844 = vst [vmem:[%s1140_s6 + $0x8] sm:$0x77] %v813_v57 }
 0x24c   :  { %821 = vsyncpa [#allocation3], 1 }
 0x24d   :  { %822 = vsyncpa [#allocation5], 1 }

</bundles_post_ra>
